<compile_context>
chip_gen: v6e
topology: v6e:2x2x1
jax: 0.10.0
libtpu: 0.0.40
codegen_flags: <defaults>
</compile_context>

<pallas_src>
import functools
import string

import jax
import jax.numpy as jnp
from jax.experimental import pallas as pl
from jax.experimental.pallas import tpu as pltpu


# ----------------------------- Pallas kernel --------------------------------
def rnn_seq_kernel(idx_ref, h0_ref, w_x_ref, w_h_ref, b_ref,
                   out_ref, h_ref, *, hidden_size, output_size):
    """One grid step t == one RNN cell step.

    idx_ref : (T,)       int32 SMEM (scalar prefetch) letter indices
    h0_ref  : (B, H)     f32   initial hidden (resident)
    w_x_ref : (I, H+Op)  f32   fused [i2h | i2o] weights, input rows (resident)
    w_h_ref : (H, H+Op)  f32   fused [i2h | i2o] weights, hidden rows (resident)
    b_ref   : (1, H+Op)  f32   fused bias (resident)
    out_ref : (1, B, Op) f32   per-step log-softmax (lane-dense padded slab)
    h_ref   : (B, H)     f32   recurrent state; VMEM-resident across all steps
                               (constant block index), final value = new hidden
    """
    t = pl.program_id(0)

    @pl.when(t == 0)
    def _():
        h_ref[...] = h0_ref[...]

    h = h_ref[...]                                          # (B, H) f32

    # One-hot input  =>  input-side matmul is a single row gather from W_x.
    x_row = w_x_ref[pl.ds(idx_ref[t], 1), :]                # (1, H+Op)

    # Single fused MXU matmul covering both i2h and i2o.
    z = (jnp.dot(h, w_h_ref[...],
                 preferred_element_type=jnp.float32,
                 precision=jax.lax.Precision.HIGHEST)
         + x_row + b_ref[...])                              # (B, H+Op)

    h_new = z[:, :hidden_size]                              # (B, H)
    logits = z[:, hidden_size:]                             # (B, Op)
    h_ref[...] = h_new

    # Numerically-stable log_softmax over the first `output_size` lanes;
    # padding lanes are forced to a huge negative before max / exp.
    lane = jax.lax.broadcasted_iota(jnp.int32, logits.shape, 1)
    logits = jnp.where(lane < output_size, logits, jnp.float32(-1e30))
    m = jnp.max(logits, axis=1, keepdims=True)
    shifted = logits - m
    lse = jnp.log(jnp.sum(jnp.exp(shifted), axis=1, keepdims=True))
    out_ref[0] = shifted - lse


# ------------------------------ JAX wrapper ----------------------------------
def rnn_forward_seq(letter_idx, h0, w_x, w_h, b_full, *, hidden_size,
                    output_size):
    """Run the RNN cell over a whole sequence in ONE pallas_call.

    letter_idx : (T,) int32 one-hot indices
    h0         : (B, H) f32 initial hidden
    Returns (log_softmax outputs (T, B, O), final hidden (B, H)).
    """
    T = int(letter_idx.shape[0])
    B, H = h0.shape
    I, N = w_x.shape
    o_pad = N - H

    kernel = functools.partial(rnn_seq_kernel,
                               hidden_size=hidden_size,
                               output_size=output_size)

    grid_spec = pltpu.PrefetchScalarGridSpec(
        num_scalar_prefetch=1,
        grid=(T,),
        in_specs=[
            pl.BlockSpec((B, H), lambda t, idx: (0, 0)),   # h0
            pl.BlockSpec((I, N), lambda t, idx: (0, 0)),   # W_x  (resident)
            pl.BlockSpec((H, N), lambda t, idx: (0, 0)),   # W_h  (resident)
            pl.BlockSpec((1, N), lambda t, idx: (0, 0)),   # bias (resident)
        ],
        out_specs=(
            pl.BlockSpec((1, B, o_pad), lambda t, idx: (t, 0, 0)),  # per-step out
            pl.BlockSpec((B, H), lambda t, idx: (0, 0)),            # hidden state
        ),
    )

    out_pad, h_final = pl.pallas_call(
        kernel,
        grid_spec=grid_spec,
        out_shape=(jax.ShapeDtypeStruct((T, B, o_pad), jnp.float32),
                   jax.ShapeDtypeStruct((B, H), jnp.float32)),
        compiler_params=pltpu.CompilerParams(
            # Recurrence over time: must stay sequential.
            dimension_semantics=("arbitrary",)),
    )(letter_idx, h0, w_x, w_h, b_full)

    # Lane-dense slab inside the kernel; slice the real O categories here.
    return out_pad[..., :output_size], h_final


# --------------------------- parameter construction --------------------------
def init_linear(key, in_features, out_features):
    """nn.Linear-style init: U(-1/sqrt(fan_in), 1/sqrt(fan_in)).

    Returns weight already transposed to (in_features, out_features)."""
    kw, kb = jax.random.split(key)
    bound = 1.0 / (in_features ** 0.5)
    w = jax.random.uniform(kw, (in_features, out_features),
                           minval=-bound, maxval=bound, dtype=jnp.float32)
    b = jax.random.uniform(kb, (out_features,),
                           minval=-bound, maxval=bound, dtype=jnp.float32)
    return w, b


def prepare_params(w_i2h, b_i2h, w_i2o, b_i2o, *, input_size, hidden_size,
                   output_size):
    """One-time prep: fuse i2h|i2o along output dim, pad O to 128 lanes,
    split K into input rows (one-hot gather) and hidden rows (matmul)."""
    I, H, O = input_size, hidden_size, output_size
    o_pad = ((O + 127) // 128) * 128
    w_o_pad = jnp.zeros((I + H, o_pad), jnp.float32).at[:, :O].set(
        w_i2o.astype(jnp.float32))
    b_o_pad = jnp.zeros((o_pad,), jnp.float32).at[:O].set(
        b_i2o.astype(jnp.float32))
    w_full = jnp.concatenate([w_i2h.astype(jnp.float32), w_o_pad], axis=1)
    b_full = jnp.concatenate([b_i2h.astype(jnp.float32), b_o_pad])[None, :]
    w_x = w_full[:I]          # (I, H + o_pad)  used via one-hot row gather
    w_h = w_full[I:]          # (H, H + o_pad)  recurrent matmul, K = H
    return w_x, w_h, b_full


# ----------------------------------- main ------------------------------------
if __name__ == "__main__":
    all_letters = string.ascii_letters + " .,;'"
    n_letters = len(all_letters)          # input_size = 57
    n_hidden = 128                        # hidden_size
    n_categories = 18                     # output_size (name-classification)

    key = jax.random.PRNGKey(0)
    k_i2h, k_i2o = jax.random.split(key)
    w_i2h, b_i2h = init_linear(k_i2h, n_letters + n_hidden, n_hidden)
    w_i2o, b_i2o = init_linear(k_i2o, n_letters + n_hidden, n_categories)

    # One-time parameter prep (hoisted out of the step loop).
    w_x, w_h, b_full = prepare_params(
        w_i2h, b_i2h, w_i2o, b_i2o,
        input_size=n_letters, hidden_size=n_hidden, output_size=n_categories)

    # lineToTensor('Albert') is one-hot; we only need the letter indices.
    line = "Albert"
    letter_idx = jnp.array([all_letters.find(c) for c in line],
                           dtype=jnp.int32)                     # (T,)
    h0 = jnp.zeros((1, n_hidden), dtype=jnp.float32)            # initHidden()

    outputs, h_final = rnn_forward_seq(
        letter_idx, h0, w_x, w_h, b_full,
        hidden_size=n_hidden, output_size=n_categories)
    jax.block_until_ready((outputs, h_final))

    # --------- plain-JAX reference: step the PyTorch forward per letter -------
    h_ref = h0
    ref_outs = []
    for t in range(len(line)):
        x = jax.nn.one_hot(letter_idx[t], n_letters, dtype=jnp.float32)[None, :]
        combined = jnp.concatenate([x, h_ref], axis=1)
        h_ref = jnp.dot(combined, w_i2h,
                        precision=jax.lax.Precision.HIGHEST) + b_i2h
        logits = jnp.dot(combined, w_i2o,
                         precision=jax.lax.Precision.HIGHEST) + b_i2o
        ref_outs.append(logits - jax.scipy.special.logsumexp(
            logits, axis=1, keepdims=True))
    ref_outs = jnp.stack(ref_outs, axis=0)                      # (T, 1, O)

    assert outputs.shape == (len(line), 1, n_categories)
    assert h_final.shape == (1, n_hidden)
    assert jnp.allclose(outputs, ref_outs, atol=1e-4), "log-softmax mismatch"
    assert jnp.allclose(h_final, h_ref, atol=1e-4), "final hidden mismatch"

    print("KERNEL_OK")
</pallas_src>

<mosaic_0001>
module attributes {stable_mosaic.version = 11 : i64} {
  func.func @rnn_seq_kernel(%arg0: i32, %arg1: memref<6xi32, #tpu.memory_space<smem>>, %arg2: memref<1x128xf32, #tpu.memory_space<vmem>>, %arg3: memref<57x256xf32, #tpu.memory_space<vmem>>, %arg4: memref<128x256xf32, #tpu.memory_space<vmem>>, %arg5: memref<1x256xf32, #tpu.memory_space<vmem>>, %arg6: memref<1x1x128xf32, #tpu.memory_space<vmem>>, %arg7: memref<1x128xf32, #tpu.memory_space<vmem>>) attributes {dimension_semantics = [#tpu.dimension_semantics<arbitrary>], iteration_bounds = array<i64: 6>, scalar_prefetch = 1 : i64, scratch_operands = 0 : i64, tpu.core_type = #tpu.core_type<tc>, window_params = [{pipeline_mode = #tpu.pipeline_mode<synchronous>, transform_indices = @transform_0, window_bounds = array<i64: 1, 128>}, {pipeline_mode = #tpu.pipeline_mode<synchronous>, transform_indices = @transform_1, window_bounds = array<i64: 57, 256>}, {pipeline_mode = #tpu.pipeline_mode<synchronous>, transform_indices = @transform_2, window_bounds = array<i64: 128, 256>}, {pipeline_mode = #tpu.pipeline_mode<synchronous>, transform_indices = @transform_3, window_bounds = array<i64: 1, 256>}, {transform_indices = @transform_4, window_bounds = array<i64: 1, 1, 128>}, {pipeline_mode = #tpu.pipeline_mode<synchronous>, transform_indices = @transform_5, window_bounds = array<i64: 1, 128>}]} {
    %c0_i32 = arith.constant 0 : i32
    %0 = arith.cmpi eq, %arg0, %c0_i32 : i32
    %1 = arith.extui %0 : i1 to i32
    %c0_i32_0 = arith.constant 0 : i32
    %2 = arith.cmpi ne, %1, %c0_i32_0 : i32
    scf.if %2 {
      %c0_15 = arith.constant 0 : index
      %c0_16 = arith.constant 0 : index
      %34 = vector.load %arg2[%c0_15, %c0_16] : memref<1x128xf32, #tpu.memory_space<vmem>>, vector<1x128xf32>
      %c0_17 = arith.constant 0 : index
      %c0_18 = arith.constant 0 : index
      %35 = vector.load %arg7[%c0_17, %c0_18] : memref<1x128xf32, #tpu.memory_space<vmem>>, vector<1x128xf32>
      tpu.vector_store %arg7[%c0_17, %c0_18], %34 {strides = array<i32>} : memref<1x128xf32, #tpu.memory_space<vmem>>, vector<1x128xf32>,
    } else {
    }
    %c0 = arith.constant 0 : index
    %c0_1 = arith.constant 0 : index
    %3 = vector.load %arg7[%c0, %c0_1] : memref<1x128xf32, #tpu.memory_space<vmem>>, vector<1x128xf32>
    %4 = arith.index_cast %arg0 : i32 to index
    %5 = memref.load %arg1[%4] : memref<6xi32, #tpu.memory_space<smem>>
    %6 = arith.index_cast %5 : i32 to index
    %c0_2 = arith.constant 0 : index
    %7 = vector.load %arg3[%6, %c0_2] : memref<57x256xf32, #tpu.memory_space<vmem>>, vector<1x256xf32>
    %c0_3 = arith.constant 0 : index
    %c0_4 = arith.constant 0 : index
    %8 = vector.load %arg4[%c0_3, %c0_4] : memref<128x256xf32, #tpu.memory_space<vmem>>, vector<128x256xf32>
    %cst = arith.constant dense<0.000000e+00> : vector<1x256xf32>
    %9 = tpu.matmul %3, %8, %cst {dimension_numbers = #tpu.dot_dimension_numbers<[1], [0], [0], [1], [0, 0, 1, 1], [], []>, precision = #tpu.contract_precision<fp32>} : vector<1x128xf32>, vector<128x256xf32>, vector<1x256xf32> -> vector<1x256xf32>
    %10 = arith.addf %9, %7 : vector<1x256xf32>
    %c0_5 = arith.constant 0 : index
    %c0_6 = arith.constant 0 : index
    %11 = vector.load %arg5[%c0_5, %c0_6] : memref<1x256xf32, #tpu.memory_space<vmem>>, vector<1x256xf32>
    %12 = arith.addf %10, %11 : vector<1x256xf32>
    %13 = vector.extract_strided_slice %12 {offsets = [0, 0], sizes = [1, 128], strides = [1, 1]} : vector<1x256xf32> to vector<1x128xf32>
    %14 = vector.extract_strided_slice %12 {offsets = [0, 128], sizes = [1, 128], strides = [1, 1]} : vector<1x256xf32> to vector<1x128xf32>
    %c0_7 = arith.constant 0 : index
    %c0_8 = arith.constant 0 : index
    %15 = vector.load %arg7[%c0_7, %c0_8] : memref<1x128xf32, #tpu.memory_space<vmem>>, vector<1x128xf32>
    tpu.vector_store %arg7[%c0_7, %c0_8], %13 {strides = array<i32>} : memref<1x128xf32, #tpu.memory_space<vmem>>, vector<1x128xf32>,
    %16 = tpu.iota {dimensions = array<i32: 1>} : vector<1x128xi32>
    %c18_i32 = arith.constant 18 : i32
    %17 = vector.broadcast %c18_i32 : i32 to vector<1x128xi32>
    %18 = arith.cmpi slt, %16, %17 : vector<1x128xi32>
    %cst_9 = arith.constant -1.000000e+30 : f32
    %19 = vector.broadcast %cst_9 : f32 to vector<1x128xf32>
    %20 = arith.select %18, %14, %19 : vector<1x128xi1>, vector<1x128xf32>
    %cst_10 = arith.constant dense<0xFF800000> : vector<1xf32>
    %21 = vector.multi_reduction <maximumf>, %20, %cst_10 [1] : vector<1x128xf32> to vector<1xf32>
    %22 = vector.shape_cast %21 : vector<1xf32> to vector<1x1xf32>
    %23 = vector.broadcast %22 : vector<1x1xf32> to vector<1x128xf32>
    %24 = arith.subf %20, %23 : vector<1x128xf32>
    %25 = math.exp %24 : vector<1x128xf32>
    %cst_11 = arith.constant dense<0.000000e+00> : vector<1xf32>
    %26 = vector.multi_reduction <add>, %25, %cst_11 [1] : vector<1x128xf32> to vector<1xf32>
    %27 = vector.shape_cast %26 : vector<1xf32> to vector<1x1xf32>
    %28 = math.log %27 : vector<1x1xf32>
    %29 = vector.broadcast %28 : vector<1x1xf32> to vector<1x128xf32>
    %30 = arith.subf %24, %29 : vector<1x128xf32>
    %c0_12 = arith.constant 0 : index
    %c0_13 = arith.constant 0 : index
    %c0_14 = arith.constant 0 : index
    %31 = vector.load %arg6[%c0_12, %c0_13, %c0_14] : memref<1x1x128xf32, #tpu.memory_space<vmem>>, vector<1x1x128xf32>
    %32 = vector.shape_cast %31 : vector<1x1x128xf32> to vector<1x128xf32>
    %33 = vector.shape_cast %30 : vector<1x128xf32> to vector<1x1x128xf32>
    tpu.vector_store %arg6[%c0_12, %c0_13, %c0_14], %33 {strides = array<i32>} : memref<1x1x128xf32, #tpu.memory_space<vmem>>, vector<1x1x128xf32>,
    return
  }
  func.func @transform_0(%arg0: i32, %arg1: memref<6xi32, #tpu.memory_space<smem>>) -> (i32, i32) {
    %c0_i32 = arith.constant 0 : i32
    %c0_i32_0 = arith.constant 0 : i32
    %c0_i32_1 = arith.constant 0 : i32
    return %c0_i32, %c0_i32_0 : i32, i32
  }
  func.func @transform_1(%arg0: i32, %arg1: memref<6xi32, #tpu.memory_space<smem>>) -> (i32, i32) {
    %c0_i32 = arith.constant 0 : i32
    %c0_i32_0 = arith.constant 0 : i32
    %c0_i32_1 = arith.constant 0 : i32
    return %c0_i32, %c0_i32_0 : i32, i32
  }
  func.func @transform_2(%arg0: i32, %arg1: memref<6xi32, #tpu.memory_space<smem>>) -> (i32, i32) {
    %c0_i32 = arith.constant 0 : i32
    %c0_i32_0 = arith.constant 0 : i32
    %c0_i32_1 = arith.constant 0 : i32
    return %c0_i32, %c0_i32_0 : i32, i32
  }
  func.func @transform_3(%arg0: i32, %arg1: memref<6xi32, #tpu.memory_space<smem>>) -> (i32, i32) {
    %c0_i32 = arith.constant 0 : i32
    %c0_i32_0 = arith.constant 0 : i32
    %c0_i32_1 = arith.constant 0 : i32
    return %c0_i32, %c0_i32_0 : i32, i32
  }
  func.func @transform_4(%arg0: i32, %arg1: memref<6xi32, #tpu.memory_space<smem>>) -> (i32, i32, i32) {
    %c0_i32 = arith.constant 0 : i32
    %c0_i32_0 = arith.constant 0 : i32
    %c0_i32_1 = arith.constant 0 : i32
    return %arg0, %c0_i32, %c0_i32_0 : i32, i32, i32
  }
  func.func @transform_5(%arg0: i32, %arg1: memref<6xi32, #tpu.memory_space<smem>>) -> (i32, i32) {
    %c0_i32 = arith.constant 0 : i32
    %c0_i32_0 = arith.constant 0 : i32
    %c0_i32_1 = arith.constant 0 : i32
    return %c0_i32, %c0_i32_0 : i32, i32
  }
}

</mosaic_0001>

<bundles_post_ra>
// kernel: tpu_custom_call.1
= control target key start
LH: loop header
LB: loop body
LE: loop exit
PB: predicated region body
PF: predicated region fallthrough
CT: control target
= control target key end

     0   :  { %s1538_s21 = smov [#allocation3]   ;;  %s2331_s0 = inlined_call_operand.hbm [shape: s32[6], index: 0, kind: input, shape index: {}]   ;;  %s2332_s1 = inlined_call_operand.vmem [shape: f32[1,128], index: 1, kind: input, shape index: {}]   ;;  %s2333_s2 = inlined_call_operand.hbm [shape: f32[57,256], index: 2, kind: input, shape index: {}]   ;;  %s2334_s3 = inlined_call_operand.hbm [shape: f32[128,256], index: 3, kind: input, shape index: {}]   ;;  %s2335_s4 = inlined_call_operand.vmem [shape: f32[1,256], index: 4, kind: input, shape index: {}]   ;;  %s2336_s5 = inlined_call_operand.hbm [shape: f32[6,1,128], index: 5, kind: output, shape index: {0}]   ;;  %s2337_s6 = inlined_call_operand.hbm [shape: f32[1,128], index: 6, kind: output, shape index: {1}]  }
   0x1   :  { %13 = dma.hbm_to_smem %s2331_s0, 16, %s1538_s21, [#allocation2] }
   0x2   :  { %1504 = dma.done.wait [#allocation2], 16 }
   0x3   :  { %1505 = vsyncadd [#allocation2], 4294967280 }
   0x4   :  { %15 = sfence }
   0x5   :  { %16 = vsyncpa [#allocation5], 0 }
   0x6   :  { %17 = vsyncpa [#allocation8], 0 }
   0x7   :  { %18 = vsyncpa [#allocation6], 0 }
   0x8   :  { %20 = vsyncpa [#allocation6 + $0x1], 0 }
   0x9   :  { %21 = vsyncpa [#allocation11], 0  ;;  %s1584_s24 = smov 0   ;;  %s1586_s25 = smov 0  }
   0xa   :  { %s1588_s26 = smov 0   ;;  %s1590_s27 = smov 0  }
   0xb LB: > { %s1605_s0 = sadd.s32 4294967295, %s1536_s27   ;;  %s1287_s28 = sadd.s32 4294967294, %s1536_s27   ;;  %s1536_s27 = sphi %s1590_s27, %s2505_s27   ;;  %s1532_s26 = sphi %s1588_s26, %s2504_s26   ;;  %s1528_s25 = sphi %s1586_s25, %s2503_s25   ;;  %s1524_s24 = sphi %s1584_s24, %s2502_s24  }
   0xc   : > { %s1609_s29 = sadd.s32 1, %s1536_s27   ;;  %s118_s30 = sadd.s32 1, %s1532_s26 }
   0xd   : > { %s115_s7 = ssub.s32 %s1536_s27, %s1609_s29  ;;  %p128_p0 = scmp.ne.s32.totalorder %s1532_s26, %s1528_s25 }
   0xe   : > { %p116_p1 = scmp.eq.s32.totalorder %s115_s7, 0  ;;  %p2338_p2 = scmp.eq.s32.totalorder %s1605_s0, 5 }
   0xf   : > { %p134_p3 = scmp.ne.s32.totalorder %s1528_s25, %s1524_s24  ;;  %p135_p4 = scmp.eq.s32.totalorder %s1287_s28, 5 }
  0x10   : > { %s1620_s8 = scalar_select %p116_p1, %s1532_s26, %s118_s30  }
  0x11   : > { %p1624_p5 = por %p2338_p2, %p128_p0  ;;  %p1628_p6 = por %p135_p4, %p134_p3 }
  0x12   : > { %p1288_p7 = scmp.ge.s32.totalorder %s1536_s27, 1  ;;  %p163_p8 = scmp.lt.s32.totalorder %s1536_s27, 7 }
  0x13   : > { %s2406_s10 = scalar_select %p1628_p6, 1, 0 }
  0x14   : > { %p2339_p10 = scmp.eq.s32.totalorder %s1605_s0, 0  ;;  %p1636_p11 = pnand %p1288_p7, %p163_p8 }
  0x15   : > { %s1539_s12 = smov [#allocation4]   ;;  %s1540_s15 = smov [#allocation7]  }
  0x16   : > { %s178_s13 = sshll.u32 %s1539_s12, 4  ;;  %p1317_p12 = pneg %p1636_p11  ;;  %s179_s13 = int_to_ptr.vmem [resolvable:$true] %s178_s13 }
  0x17   : > { %s191_s16 = sshll.u32 %s1540_s15, 4  ;;  %s1397_s17 = scalar_lea.vmem %s179_s13, 2048  ;;  %s192_s16 = int_to_ptr.vmem [resolvable:$true] %s191_s16 }
  0x18   : > { %p1644_p13 = pnand %p2339_p10, %p1317_p12  ;;  %p1398_p1 = scmp.ne.s32.totalorder %s179_s13, %s1397_s17 }
  0x19   : > { %p1405_p7 = scmp.lt.s32.totalorder %s179_s13, %s179_s13  ;;  %p1406_p8 = scmp.lt.s32.totalorder %s1397_s17, %s1397_s17 }
  0x1a   : > { %p1388_p0 = pneg %p1644_p13 }
  0x1b   : > { %p1407_p2 = por %p1406_p8, %p1405_p7 }
  0x1c   : > { %p1400_p3 = pnand %p1398_p1, %p1388_p0 }
  0x1e   : > { %p1401_p4 = pneg %p1400_p3 }
  0x20   : > { %p1408_p12 = pnand %p1407_p2, %p1401_p4 }
  0x22   : > { %1411 = shalt.err (!%p1408_p12)
}
  0x23   : > { %s1541_s18 = smov 256   ;;  %s1542_s19 = smov 16  }
  0x24   : > { %1320 = dma.hbm_to_vmem [thread:$0]  (!%p1644_p13), %s2333_s2, 2048, %s179_s13, [#allocation5], %s1541_s18, %s1541_s18, %s1542_s19  }
  0x25   : > { %s1423_s22 = scalar_lea.vmem %s192_s16, 4096  ;;  %p1431_p10 = scmp.lt.s32.totalorder %s192_s16, %s192_s16 }
  0x26   : > { %p1424_p9 = scmp.ne.s32.totalorder %s192_s16, %s1423_s22  ;;  %p1432_p6 = scmp.lt.s32.totalorder %s1423_s22, %s1423_s22 }
  0x28   : > { %p1426_p1 = pnand %p1424_p9, %p1388_p0  ;;  %p1433_p7 = por %p1432_p6, %p1431_p10 }
  0x2a   : > { %p1427_p3 = pneg %p1426_p1 }
  0x2c   : > { %p1434_p2 = pnand %p1433_p7, %p1427_p3 }
  0x2e   : > { %1437 = shalt.err (!%p1434_p2)
}
  0x2f   : > { %1323 = dma.hbm_to_vmem [thread:$0]  (!%p1644_p13), %s2334_s3, 4096, %s192_s16, [#allocation8], %s1541_s18, %s1541_s18, %s1542_s19  }
  0x30   : > { %210 = sbr.rel (%p1636_p11) target bundleno = 717 (0x2cd), region = 36 }
  0x35   : > { %p2409_p4 = scmp.eq.s32.totalorder %s1605_s0, 0 }
  0x37   : > { %1507 = dma.done.wait (%p2409_p4), [#allocation5], 2048   ;;  %p2410_p9 = pmov %p2409_p4 }
  0x38   : > { %p2411_p0 = pmov %p2409_p4 }
  0x39   : > { %1509 = vsyncadd (%p2410_p9), [#allocation5], 4294965248 }
  0x3a   : > { %1511 = dma.done.wait (%p2411_p0), [#allocation8], 4096   ;;  %p2412_p6 = pmov %p2411_p0 }
  0x3b   : > { %s232_s30 = sand.u32 1, %s1528_s25   ;;  %p2413_p10 = scmp.ne.s32.totalorder %s1605_s0, 0 }
  0x3c   : > { %1513 = vsyncadd (%p2412_p6), [#allocation8], 4294963200  ;;  %s1679_s7 = scalar_lea.vmem [#allocation9], %s232_s30 }
  0x3d   : > { %239 = sbr.rel (%p2413_p10) target bundleno = 68 (0x44), region = 48 }
  0x42   : > { %v240_v0 = vld [vmem:[%s2332_s1] sm:$0x1] }
  0x43   : > { %241 = vst [vmem:[#allocation10] sm:$0x1] %v240_v0 }
  0x44 PF: > { %v284_v1 = vld [vmem:[#allocation7 + $0xf8] sm:$0xff]  ;;  %v283_v2 = vld [vmem:[#allocation7 + $0xf0] sm:$0xff]  ;;  %v282_v3 = vld [vmem:[#allocation7 + $0xe8] sm:$0xff]  ;;  %v2354_v10 = vmov 0.0   ;;  %s243_s13 = sld [smem:[#allocation3 + %s1605_s0]]  ;;  %vm1170_vm1 = vcmask 1040384  }
  0x45   : > { %v1686_v4 = vand.u32 4294901760, %v284_v1  ;;  %v1688_v5 = vand.u32 4294901760, %v283_v2  ;;  %v1690_v6 = vand.u32 4294901760, %v282_v3  ;;  %v281_v7 = vld [vmem:[#allocation7 + $0xe0] sm:$0xff]  ;;  %v280_v8 = vld [vmem:[#allocation7 + $0xd8] sm:$0xff]  ;;  %v279_v9 = vld [vmem:[#allocation7 + $0xd0] sm:$0xff]  ;;  %392 = vmatprep.mubr.f32.mxu0 %v2354_v10  ;;  %628 = vmatprep.mubr.f32.mxu1 %v2354_v10 }
  0x46   : > { %v1694_v11 = vand.u32 4294901760, %v281_v7  ;;  %v1696_v12 = vand.u32 4294901760, %v280_v8  ;;  %v1698_v13 = vand.u32 4294901760, %v279_v9  ;;  %v278_v14 = vld [vmem:[#allocation7 + $0xc8] sm:$0xff]  ;;  %v277_v15 = vld [vmem:[#allocation7 + $0xc0] sm:$0xff]  ;;  %v276_v16 = vld [vmem:[#allocation7 + $0xb8] sm:$0xff] }
  0x47   : > { %297 = vmatprep.subr.mxu0 %v1686_v4  ;;  %v1701_v17 = vand.u32 4294901760, %v278_v14  ;;  %v1703_v18 = vand.u32 4294901760, %v277_v15  ;;  %v1705_v19 = vand.u32 4294901760, %v276_v16  ;;  %v1708_v20 = vsub.f32 %v284_v1, %v1686_v4  ;;  %v1710_v21 = vld [vmem:[#allocation7 + $0xb0] sm:$0xff]  ;;  %v1712_v22 = vld [vmem:[#allocation7 + $0xa8] sm:$0xff]  ;;  %v1714_v23 = vld [vmem:[#allocation7 + $0xa0] sm:$0xff] }
  0x48   : > { %299 = vmatpush1.msra.mxu0 %v1688_v5  ;;  %v1718_v24 = vand.u32 4294901760, %v1710_v21  ;;  %v1721_v25 = vsub.f32 %v283_v2, %v1688_v5  ;;  %v1724_v26 = vand.u32 4294901760, %v1712_v22  ;;  %v1727_v27 = vsub.f32 %v282_v3, %v1690_v6  ;;  %v1729_v28 = vld [vmem:[#allocation7 + $0x98] sm:$0xff]  ;;  %v1731_v29 = vld [vmem:[#allocation7 + $0x90] sm:$0xff]  ;;  %v1733_v30 = vld [vmem:[#allocation7 + $0x88] sm:$0xff]  ;;  %s1544_s21 = smov [#allocation10]  }
  0x49   : > { %301 = vmatprep.subr.mxu0 %v1690_v6  ;;  %v2352_v31 = vand.u32 4294901760, %v1708_v20  ;;  %v1738_v32 = vand.u32 4294901760, %v1714_v23  ;;  %v1741_v33 = vsub.f32 %v281_v7, %v1694_v11  ;;  %v1744_v34 = vand.u32 4294901760, %v1729_v28  ;;  %v1755_v39 = vld [vmem:[#allocation7 + $0x80] sm:$0xff]  ;;  %v1779_v48 = vld [vmem:[#allocation7 + $0x78] sm:$0xff]  ;;  %v1789_v53 = vld [vmem:[#allocation7 + $0x70] sm:$0xff] }
  0x4a   : > { %303 = vmatpush1.msra.mxu0 %v1694_v11  ;;  %v2351_v35 = vand.u32 4294901760, %v1721_v25  ;;  %v2349_v36 = vand.u32 4294901760, %v1727_v27  ;;  %v1750_v37 = vsub.f32 %v280_v8, %v1696_v12  ;;  %v1753_v38 = vand.u32 4294901760, %v1731_v29  ;;  %v1796_v58 = vld [vmem:[#allocation7 + $0x68] sm:$0xff]  ;;  %v1808_v63 = vld [vmem:[#allocation7 + $0x60] sm:$0xff]  ;;  %v1820_v7 = vld [vmem:[#allocation7 + $0x58] sm:$0xff] }
  0x4b   : > { %2414 = vst [vmem:[#allocation17_spill] sm:$0xff] %v1738_v32  ;;  %2415 = vst [vmem:[#allocation18_spill] sm:$0xff] %v1744_v34  ;;  %305 = vmatprep.subr.mxu0 %v1696_v12  ;;  %v407_v40 = vsub.f32 %v1708_v20, %v2352_v31  ;;  %v2347_v41 = vand.u32 4294901760, %v1741_v33  ;;  %v1763_v42 = vsub.f32 %v279_v9, %v1698_v13  ;;  %v1766_v43 = vand.u32 4294901760, %v1733_v30  ;;  %s244_s14 = sshra.s32 %s243_s13, 3  ;;  %s247_s15 = sand.u32 7, %s243_s13 }
  0x4c   : > { %2416 = vst [vmem:[#allocation19_spill] sm:$0xff] %v1753_v38  ;;  %307 = vmatpush1.msra.mxu0 %v1698_v13  ;;  %v413_v44 = vsub.f32 %v1721_v25, %v2351_v35  ;;  %v419_v45 = vsub.f32 %v1727_v27, %v2349_v36  ;;  %v2346_v46 = vand.u32 4294901760, %v1750_v37  ;;  %v1777_v47 = vsub.f32 %v278_v14, %v1701_v17  ;;  %v1911_v36 = vld [vmem:[#allocation7 + $0x28] sm:$0xff]  ;;  %v1921_v35 = vld [vmem:[#allocation7 + $0x20] sm:$0xff]  ;;  %s1302_s16 = sshll.u32 %s244_s14, 4  ;;  %s1208_s22 = sshll.u32 %s1544_s21, 4  ;;  %s1209_s22 = int_to_ptr.vmem [resolvable:$true] %s1208_s22 }
  0x4d   : > { %2417 = vst [vmem:[#allocation20_spill] sm:$0xff] %v1766_v43  ;;  %309 = vmatprep.subr.mxu0 %v1701_v17  ;;  %v408_v49 = vand.u32 4294901760, %v407_v40  ;;  %v425_v50 = vsub.f32 %v1741_v33, %v2347_v41  ;;  %v2344_v51 = vand.u32 4294901760, %v1763_v42  ;;  %v1787_v52 = vand.u32 4294901760, %v1755_v39  ;;  %s250_s17 = sadd.s32 %s1302_s16, %s247_s15  ;;  %s1438_s23 = scalar_lea.vmem %s1209_s22, 16 }
  0x4e   : > { %311 = vmatpush1.msra.mxu0 %v1703_v18  ;;  %v414_v54 = vand.u32 4294901760, %v413_v44  ;;  %v420_v55 = vand.u32 4294901760, %v419_v45  ;;  %v431_v56 = vsub.f32 %v1750_v37, %v2346_v46  ;;  %v2342_v57 = vand.u32 4294901760, %v1777_v47  ;;  %v1898_v46 = vld [vmem:[#allocation7 + $0x30] sm:$0xff]  ;;  %s251_s18 = scalar_lea.vmem [#allocation4], %s250_s17  ;;  %p1439_p11 = scmp.ne.s32.totalorder %s1209_s22, %s1438_s23 }
  0x4f   : > { %2418 = vst [vmem:[#allocation21_spill] sm:$0xff] %v1787_v52  ;;  %313 = vmatprep.subr.mxu0 %v1705_v19  ;;  %409 = vmatprep.subr.mxu1 %v408_v49  ;;  %v426_v59 = vand.u32 4294901760, %v425_v50  ;;  %v437_v60 = vsub.f32 %v1763_v42, %v2344_v51  ;;  %v1803_v61 = vsub.f32 %v277_v15, %v1703_v18  ;;  %v1806_v62 = vand.u32 4294901760, %v1779_v48  ;;  %p2497_p13 = scmp.eq.s32.totalorder %s1605_s0, 5  ;;  %s1444_s28 = scalar_lea.vmem %s1209_s22, 32 }
  0x50   : > { %315 = vmatpush1.msra.mxu0 %v1718_v24  ;;  %415 = vmatpush1.msra.mxu1 %v414_v54  ;;  %v432_v0 = vand.u32 4294901760, %v431_v56  ;;  %v443_v1 = vsub.f32 %v1777_v47, %v2342_v57  ;;  %v1815_v2 = vsub.f32 %v276_v16, %v1705_v19  ;;  %v1818_v3 = vand.u32 4294901760, %v1789_v53  ;;  %v1831_v16 = vld [vmem:[#allocation7 + $0x50] sm:$0xff]  ;;  %p1445_p1 = scmp.lt.s32.totalorder %s1209_s22, %s1209_s22  ;;  %p1446_p3 = scmp.lt.s32.totalorder %s1444_s28, %s1438_s23 }
  0x51   : > { %2419 = vst [vmem:[#allocation22_spill] sm:$0xff] %v1806_v62  ;;  %317 = vmatprep.subr.mxu0 %v1724_v26  ;;  %421 = vmatprep.subr.mxu1 %v420_v55  ;;  %v438_v8 = vand.u32 4294901760, %v437_v60  ;;  %v2341_v9 = vand.u32 4294901760, %v1803_v61  ;;  %v1826_v14 = vsub.f32 %v1710_v21, %v1718_v24  ;;  %v1829_v15 = vand.u32 4294901760, %v1796_v58  ;;  %p1440_p8 = pnand %p1439_p11, %p2497_p13 }
  0x52   : > { %2420 = vst [vmem:[#allocation23_spill] sm:$0xff] %v1818_v3  ;;  %319 = vmatpush1.msra.mxu0 %v1738_v32  ;;  %427 = vmatpush1.msra.mxu1 %v426_v59  ;;  %v444_v40 = vand.u32 4294901760, %v443_v1  ;;  %v2340_v44 = vand.u32 4294901760, %v1815_v2  ;;  %v1837_v45 = vsub.f32 %v1712_v22, %v1724_v26  ;;  %v1840_v49 = vand.u32 4294901760, %v1808_v63  ;;  %v1854_v22 = vld [vmem:[#allocation7 + $0x48] sm:$0xff]  ;;  %p1447_p7 = por %p1446_p3, %p1445_p1 }
  0x53   : > { %2421 = vst [vmem:[#allocation24_spill] sm:$0xff] %v1829_v15  ;;  %321 = vmatprep.subr.mxu0 %v1744_v34  ;;  %433 = vmatprep.subr.mxu1 %v432_v0  ;;  %v449_v21 = vsub.f32 %v1803_v61, %v2341_v9  ;;  %v2343_v50 = vand.u32 4294901760, %v1826_v14  ;;  %v1849_v54 = vsub.f32 %v1714_v23, %v1738_v32  ;;  %v1852_v55 = vand.u32 4294901760, %v1820_v7  ;;  %v1877_v9 = vld [vmem:[#allocation7 + $0x40] sm:$0xff]  ;;  %p1441_p12 = pneg %p1440_p8 }
  0x54   : > { %2422 = vst [vmem:[#allocation25_spill] sm:$0xff] %v1840_v49  ;;  %323 = vmatpush1.msra.mxu0 %v1753_v38  ;;  %439 = vmatpush1.msra.mxu1 %v438_v8  ;;  %v455_v56 = vsub.f32 %v1815_v2, %v2340_v44  ;;  %v2345_v59 = vand.u32 4294901760, %v1837_v45  ;;  %v1863_v60 = vsub.f32 %v1729_v28, %v1744_v34  ;;  %v1866_v23 = vand.u32 4294901760, %v1831_v16  ;;  %v242_v34 = vld [vmem:[#allocation10] sm:$0x1] }
  0x55   : > { %2423 = vst [vmem:[#allocation26_spill] sm:$0xff] %v1852_v55  ;;  %325 = vmatprep.subr.mxu0 %v1766_v43  ;;  %445 = vmatprep.subr.mxu1 %v444_v40  ;;  %v450_v0 = vand.u32 4294901760, %v449_v21  ;;  %v461_v1 = vsub.f32 %v1826_v14, %v2343_v50  ;;  %v2348_v8 = vand.u32 4294901760, %v1849_v54  ;;  %v1875_v44 = vsub.f32 %v1731_v29, %v1753_v38  ;;  %v1887_v50 = vld [vmem:[#allocation7 + $0x38] sm:$0xff]  ;;  %p1448_p2 = pnand %p1447_p7, %p1441_p12 }
  0x56   : > { %2424 = vst [vmem:[#allocation27_spill] sm:$0xff] %v1866_v23  ;;  %327 = vmatpush1.msra.mxu0 %v1787_v52  ;;  %v456_v28 = vand.u32 4294901760, %v455_v56  ;;  %v467_v40 = vsub.f32 %v1837_v45, %v2345_v59  ;;  %v2350_v21 = vand.u32 4294901760, %v1863_v60  ;;  %v1885_v57 = vand.u32 4294901760, %v1854_v22 }
  0x57   : > { %451 = vmatpush1.msra.mxu1 %v450_v0  ;;  %329 = vmatprep.subr.mxu0 %v1806_v62  ;;  %v462_v29 = vand.u32 4294901760, %v461_v1  ;;  %v473_v51 = vsub.f32 %v1849_v54, %v2348_v8  ;;  %v2353_v56 = vand.u32 4294901760, %v1875_v44  ;;  %v1896_v59 = vsub.f32 %v1733_v30, %v1766_v43 }
  0x58   : > { %2425 = vst [vmem:[#allocation28_spill] sm:$0xff] %v1885_v57  ;;  %457 = vmatprep.subr.mxu1 %v456_v28  ;;  %331 = vmatpush1.msra.mxu0 %v1818_v3  ;;  %v468_v41 = vand.u32 4294901760, %v467_v40  ;;  %v479_v0 = vsub.f32 %v1863_v60, %v2350_v21  ;;  %v1905_v1 = vand.u32 4294901760, %v1877_v9  ;;  %v1909_v8 = vsub.f32 %v1755_v39, %v1787_v52 }
  0x59   : > { %463 = vmatpush1.msra.mxu1 %v462_v29  ;;  %333 = vmatprep.subr.mxu0 %v1829_v15  ;;  %v474_v30 = vand.u32 4294901760, %v473_v51  ;;  %v485_v28 = vsub.f32 %v1875_v44, %v2353_v56  ;;  %v2358_v40 = vand.u32 4294901760, %v1896_v59  ;;  %v1919_v21 = vand.u32 4294901760, %v1887_v50  ;;  %v1932_v56 = vld [vmem:[#allocation7 + $0x18] sm:$0xff] }
  0x5a   : > { %2426 = vst [vmem:[#allocation29_spill] sm:$0xff] %v1905_v1  ;;  %469 = vmatprep.subr.mxu1 %v468_v41  ;;  %335 = vmatpush1.msra.mxu0 %v1840_v49  ;;  %v480_v39 = vand.u32 4294901760, %v479_v0  ;;  %v2361_v29 = vand.u32 4294901760, %v1909_v8  ;;  %v1927_v51 = vsub.f32 %v1779_v48, %v1806_v62  ;;  %v1930_v31 = vand.u32 4294901760, %v1898_v46 }
  0x5b   : > { %475 = vmatpush1.msra.mxu1 %v474_v30  ;;  %337 = vmatprep.subr.mxu0 %v1852_v55  ;;  %v486_v10 = vand.u32 4294901760, %v485_v28  ;;  %v491_v41 = vsub.f32 %v1896_v59, %v2358_v40  ;;  %v1940_v0 = vsub.f32 %v1789_v53, %v1818_v3  ;;  %v1943_v48 = vand.u32 4294901760, %v1911_v36  ;;  %v1957_v53 = vld [vmem:[#allocation7 + $0x10] sm:$0xff] }
  0x5c   : > { %2427 = vst [vmem:[#allocation30_spill] sm:$0xff] %v1930_v31  ;;  %481 = vmatprep.subr.mxu1 %v480_v39  ;;  %339 = vmatpush1.msra.mxu0 %v1866_v23  ;;  %v497_v30 = vsub.f32 %v1909_v8, %v2361_v29  ;;  %v1952_v62 = vsub.f32 %v1796_v58, %v1829_v15  ;;  %v1955_v40 = vand.u32 4294901760, %v1921_v35  ;;  %v1966_v28 = vand.u32 4294901760, %v1932_v56  ;;  %v1968_v58 = vld [vmem:[#allocation7 + $0x8] sm:$0xff] }
  0x5d   : > { %2428 = vst [vmem:[#allocation31_spill] sm:$0xff] %v1943_v48  ;;  %487 = vmatpush1.msra.mxu1 %v486_v10  ;;  %341 = vmatprep.subr.mxu0 %v1885_v57  ;;  %v492_v39 = vand.u32 4294901760, %v491_v41  ;;  %v1963_v29 = vsub.f32 %v1808_v63, %v1840_v49  ;;  %v2430_v52 = vand.u32 4294901760, %v1927_v51  ;;  %v1977_v3 = vsub.f32 %v1820_v7, %v1852_v55  ;;  %v1991_v41 = vld [vmem:[#allocation7] sm:$0xff] }
  0x5e   : > { %2429 = vst [vmem:[#allocation32_spill] sm:$0xff] %v1955_v40  ;;  %343 = vmatpush1.msra.mxu0 %v1905_v1  ;;  %v498_v15 = vand.u32 4294901760, %v497_v30  ;;  %v2431_v63 = vand.u32 4294901760, %v1940_v0  ;;  %v1985_v30 = vand.u32 4294901760, %v1957_v53  ;;  %v1999_v43 = vand.u32 4294901760, %v1968_v58 }
  0x5f   : > { %v503_v10 = vsub.f32 %v1927_v51, %v2430_v52  ;;  %493 = vmatprep.subr.mxu1 %v492_v39  ;;  %345 = vmatprep.subr.mxu0 %v1919_v21  ;;  %v1989_v52 = vsub.f32 %v1831_v16, %v1866_v23  ;;  %v2433_v39 = vand.u32 4294901760, %v1952_v62  ;;  %v2434_v16 = vand.u32 4294901760, %v1963_v29 }
  0x60   : > { %v509_v49 = vsub.f32 %v1940_v0, %v2431_v63  ;;  %2432 = vst [vmem:[#allocation33_spill] sm:$0xff] %v1985_v30  ;;  %499 = vmatpush1.msra.mxu1 %v498_v15  ;;  %347 = vmatpush1.msra.mxu0 %v1930_v31  ;;  %v2380_v63 = vand.u32 4294901760, %v1977_v3  ;;  %v2015_v32 = vand.u32 4294901760, %v1991_v41 }
  0x61   : > { %v504_v7 = vand.u32 4294901760, %v503_v10  ;;  %v515_v55 = vsub.f32 %v1952_v62, %v2433_v39  ;;  %349 = vmatprep.subr.mxu0 %v1943_v48  ;;  %v521_v23 = vsub.f32 %v1963_v29, %v2434_v16  ;;  %v2008_v10 = vsub.f32 %v1854_v22, %v1885_v57 }
  0x62   : > { %v510_v38 = vand.u32 4294901760, %v509_v49  ;;  %351 = vmatpush1.msra.mxu0 %v1955_v40  ;;  %v527_v49 = vsub.f32 %v1977_v3, %v2380_v63  ;;  %v2019_v16 = vsub.f32 %v1877_v9, %v1905_v1  ;;  %v2435_v22 = vand.u32 4294901760, %v1989_v52 }
  0x63   : > { %505 = vmatprep.subr.mxu1 %v504_v7  ;;  %v516_v39 = vand.u32 4294901760, %v515_v55  ;;  %v522_v15 = vand.u32 4294901760, %v521_v23  ;;  %353 = vmatprep.subr.mxu0 %v1966_v28  ;;  %v2383_v7 = vand.u32 4294901760, %v2008_v10  ;;  %v2028_v63 = vsub.f32 %v1887_v50, %v1919_v21 }
  0x64   : > { %511 = vmatpush1.msra.mxu1 %v510_v38  ;;  %v533_v55 = vsub.f32 %v1989_v52, %v2435_v22  ;;  %v528_v57 = vand.u32 4294901760, %v527_v49  ;;  %355 = vmatpush1.msra.mxu0 %v1985_v30  ;;  %v2386_v9 = vand.u32 4294901760, %v2019_v16  ;;  %v2032_v38 = vand.u32 4294901760, %v242_v34 }
  0x65   : > { %517 = vmatprep.subr.mxu1 %v516_v39  ;;  %v2036_v23 = vsub.f32 %v1898_v46, %v1930_v31  ;;  %357 = vmatprep.subr.mxu0 %v1999_v43  ;;  %v539_v50 = vsub.f32 %v2008_v10, %v2383_v7  ;;  %v2045_v49 = vsub.f32 %v1911_v36, %v1943_v48  ;;  %v2437_v36 = vand.u32 4294901760, %v2028_v63 }
  0x66   : > { %2436 = vst [vmem:[#allocation34_spill] sm:$0xff] %v2032_v38  ;;  %523 = vmatpush1.msra.mxu1 %v522_v15  ;;  %v534_v22 = vand.u32 4294901760, %v533_v55  ;;  %359 = vmatpush1.msra.mxu0 %v2015_v32  ;;  %v545_v46 = vsub.f32 %v2019_v16, %v2386_v9  ;;  %v2052_v15 = vsub.f32 %v242_v34, %v2032_v38 }
  0x67   : > { %529 = vmatprep.subr.mxu1 %v528_v57  ;;  %v2057_v7 = vsub.f32 %v1921_v35, %v1955_v40  ;;  %v540_v39 = vand.u32 4294901760, %v539_v50  ;;  %v551_v57 = vsub.f32 %v2028_v63, %v2437_v36  ;;  %638 = vmatprep.subr.mxu0 %v1708_v20  ;;  %v2391_v48 = vand.u32 4294901760, %v2045_v49 }
  0x68   : > { %535 = vmatpush1.msra.mxu1 %v534_v22  ;;  %v2066_v34 = vsub.f32 %v1932_v56, %v1966_v28  ;;  %v546_v9 = vand.u32 4294901760, %v545_v46  ;;  %v2392_v55 = vand.u32 4294901760, %v2052_v15  ;;  %v2438_v35 = vand.u32 4294901760, %v2036_v23 }
  0x69   : > { %v2395_v50 = vand.u32 4294901760, %v2057_v7  ;;  %541 = vmatprep.subr.mxu1 %v540_v39  ;;  %v552_v40 = vand.u32 4294901760, %v551_v57  ;;  %v563_v36 = vsub.f32 %v2045_v49, %v2391_v48  ;;  %v2079_v56 = vsub.f32 %v1957_v53, %v1985_v30 }
  0x6a   : > { %v557_v22 = vsub.f32 %v2036_v23, %v2438_v35  ;;  %v2399_v31 = vand.u32 4294901760, %v2066_v34  ;;  %547 = vmatpush1.msra.mxu1 %v546_v9  ;;  %v396_v46 = vsub.f32 %v2052_v15, %v2392_v55  ;;  %v2089_v57 = vsub.f32 %v1968_v58, %v1999_v43 }
  0x6b   : > { %2439 = vst [vmem:[#allocation35_spill] sm:$0xff] %v2079_v56  ;;  %v569_v39 = vsub.f32 %v2057_v7, %v2395_v50  ;;  %553 = vmatprep.subr.mxu1 %v552_v40  ;;  %v564_v48 = vand.u32 4294901760, %v563_v36  ;;  %v2398_v9 = vand.u32 4294901760, %v2079_v56  ;;  %v2097_v55 = vsub.f32 %v1991_v41, %v2015_v32 }
  0x6c   : > { %v558_v35 = vand.u32 4294901760, %v557_v22  ;;  %v575_v53 = vsub.f32 %v2066_v34, %v2399_v31  ;;  %v397_v22 = vand.u32 4294901760, %v396_v46  ;;  %v2397_v50 = vand.u32 4294901760, %v2089_v57 }
  0x6d   : > { %2440 = vst [vmem:[#allocation36_spill] sm:$0xff] %v2097_v55  ;;  %v570_v30 = vand.u32 4294901760, %v569_v39  ;;  %v581_v40 = vsub.f32 %v2079_v56, %v2398_v9  ;;  %v2396_v36 = vand.u32 4294901760, %v2097_v55  ;;  %v2441_v39 = vmov 0.0   ;;  %v2453_v9 = vld [vmem:[#allocation28_spill] sm:$0xff] }
  0x6e   : > { %559 = vmatpush1.msra.mxu1 %v558_v35  ;;  %v576_v58 = vand.u32 4294901760, %v575_v53  ;;  %398 = vmatmul.mubr.f32.vlgmr.msra.gmra.mxu0 %v397_v22  ;;  %v587_v41 = vsub.f32 %v2089_v57, %v2397_v50  ;;  %v2442_v53 = vld [vmem:[#allocation17_spill] sm:$0xff]  ;;  %v2443_v22 = vld [vmem:[#allocation18_spill] sm:$0xff]  ;;  %v2452_v50 = vld [vmem:[#allocation27_spill] sm:$0xff]  ;;  %v2454_v31 = vand.u32 4294901760, %v1708_v20  ;;  %v2461_v20 = vand.u32 4294901760, %v1750_v37 }
  0x6f   : > { %565 = vmatprep.subr.mxu1 %v564_v48  ;;  %641 = vmatpush1.msra.mxu0 %v1721_v25  ;;  %v582_v46 = vand.u32 4294901760, %v581_v40  ;;  %v593_v48 = vsub.f32 %v2097_v55, %v2396_v36  ;;  %v2445_v40 = vld [vmem:[#allocation20_spill] sm:$0xff]  ;;  %v2451_v36 = vld [vmem:[#allocation26_spill] sm:$0xff] }
  0x70   : > { %571 = vmatpush1.msra.mxu1 %v570_v30  ;;  %644 = vmatprep.subr.mxu0 %v1727_v27  ;;  %v588_v35 = vand.u32 4294901760, %v587_v41  ;;  %v2446_v41 = vld [vmem:[#allocation21_spill] sm:$0xff] }
  0x71   : > { %577 = vmatprep.subr.mxu1 %v576_v58  ;;  %764 = vmatprep.mubr.f32.mxu0 %v2441_v39  ;;  %v594_v30 = vand.u32 4294901760, %v593_v48  ;;  %v2444_v58 = vld [vmem:[#allocation19_spill] sm:$0xff] }
  0x72   : > { %647 = vmatpush1.msra.mxu0 %v1741_v33  ;;  %583 = vmatpush1.msra.mxu1 %v582_v46  ;;  %v2447_v46 = vld [vmem:[#allocation22_spill] sm:$0xff]  ;;  %v2448_v48 = vld [vmem:[#allocation23_spill] sm:$0xff] }
  0x73   : > { %650 = vmatprep.subr.mxu0 %v1750_v37  ;;  %589 = vmatprep.subr.mxu1 %v588_v35  ;;  %v2449_v35 = vld [vmem:[#allocation24_spill] sm:$0xff]  ;;  %v2466_v37 = vand.u32 4294901760, %v2052_v15 }
  0x74   : > { %653 = vmatpush1.msra.mxu0 %v1763_v42  ;;  %595 = vmatpush1.msra.mxu1 %v594_v30  ;;  %v2450_v30 = vld [vmem:[#allocation25_spill] sm:$0xff] }
  0x75   : > { %656 = vmatprep.subr.mxu0 %v1777_v47  ;;  %630 = vmatmul.mubr.f32.vlgmr.msra.gmra.mxu1 %v2032_v38  ;;  %v2455_v38 = vld [vmem:[#allocation30_spill] sm:$0xff] }
  0x76   : > { %659 = vmatpush1.msra.mxu0 %v1803_v61  ;;  %774 = vmatprep.subr.mxu1 %v1686_v4 }
  0x77   : > { %662 = vmatprep.subr.mxu0 %v1815_v2  ;;  %776 = vmatpush1.msra.mxu1 %v1688_v5 }
  0x78   : > { %665 = vmatpush1.msra.mxu0 %v1826_v14  ;;  %778 = vmatprep.subr.mxu1 %v1690_v6 }
  0x79   : > { %668 = vmatprep.subr.mxu0 %v1837_v45  ;;  %780 = vmatpush1.msra.mxu1 %v1694_v11 }
  0x7a   : > { %671 = vmatpush1.msra.mxu0 %v1849_v54  ;;  %782 = vmatprep.subr.mxu1 %v1696_v12 }
  0x7b   : > { %674 = vmatprep.subr.mxu0 %v1863_v60  ;;  %784 = vmatpush1.msra.mxu1 %v1698_v13 }
  0x7c   : > { %677 = vmatpush1.msra.mxu0 %v1875_v44  ;;  %786 = vmatprep.subr.mxu1 %v1701_v17 }
  0x7d   : > { %680 = vmatprep.subr.mxu0 %v1896_v59  ;;  %788 = vmatpush1.msra.mxu1 %v1703_v18 }
  0x7e   : > { %683 = vmatpush1.msra.mxu0 %v1909_v8  ;;  %790 = vmatprep.subr.mxu1 %v1705_v19 }
  0x7f   : > { %686 = vmatprep.subr.mxu0 %v1927_v51  ;;  %792 = vmatpush1.msra.mxu1 %v1718_v24 }
  0x80   : > { %689 = vmatpush1.msra.mxu0 %v1940_v0  ;;  %794 = vmatprep.subr.mxu1 %v1724_v26 }
  0x81   : > { %692 = vmatprep.subr.mxu0 %v1952_v62  ;;  %796 = vmatpush1.msra.mxu1 %v2442_v53 }
  0x82   : > { %695 = vmatpush1.msra.mxu0 %v1963_v29  ;;  %798 = vmatprep.subr.mxu1 %v2443_v22 }
  0x83   : > { %698 = vmatprep.subr.mxu0 %v1977_v3  ;;  %800 = vmatpush1.msra.mxu1 %v2444_v58 }
  0x84   : > { %701 = vmatpush1.msra.mxu0 %v1989_v52  ;;  %802 = vmatprep.subr.mxu1 %v2445_v40 }
  0x85   : > { %704 = vmatprep.subr.mxu0 %v2008_v10  ;;  %804 = vmatpush1.msra.mxu1 %v2446_v41 }
  0x86   : > { %707 = vmatpush1.msra.mxu0 %v2019_v16  ;;  %806 = vmatprep.subr.mxu1 %v2447_v46 }
  0x87   : > { %710 = vmatprep.subr.mxu0 %v2028_v63  ;;  %808 = vmatpush1.msra.mxu1 %v2448_v48 }
  0x88   : > { %713 = vmatpush1.msra.mxu0 %v2036_v23  ;;  %810 = vmatprep.subr.mxu1 %v2449_v35 }
  0x89   : > { %716 = vmatprep.subr.mxu0 %v2045_v49  ;;  %812 = vmatpush1.msra.mxu1 %v2450_v30 }
  0x8a   : > { %719 = vmatpush1.msra.mxu0 %v2057_v7  ;;  %814 = vmatprep.subr.mxu1 %v2451_v36 }
  0x8b   : > { %722 = vmatprep.subr.mxu0 %v2066_v34  ;;  %816 = vmatpush1.msra.mxu1 %v2452_v50  ;;  %v2456_v50 = vand.u32 4294901760, %v1721_v25  ;;  %v2463_v25 = vand.u32 4294901760, %v1763_v42  ;;  %v2468_v42 = vand.u32 4294901760, %v1826_v14  ;;  %v2485_v14 = vand.u32 4294901760, %v2045_v49 }
  0x8c   : > { %725 = vmatpush1.msra.mxu0 %v2079_v56  ;;  %818 = vmatprep.subr.mxu1 %v2453_v9  ;;  %v2457_v56 = vld [vmem:[#allocation31_spill] sm:$0xff]  ;;  %v2458_v9 = vand.u32 4294901760, %v1727_v27  ;;  %v2464_v27 = vand.u32 4294901760, %v1777_v47  ;;  %v2469_v47 = vand.u32 4294901760, %v1837_v45  ;;  %v2487_v45 = vand.u32 4294901760, %v2066_v34 }
  0x8d   : > { %728 = vmatprep.subr.mxu0 %v2089_v57  ;;  %820 = vmatpush1.msra.mxu1 %v1905_v1  ;;  %v2459_v1 = vld [vmem:[#allocation32_spill] sm:$0xff] }
  0x8e   : > { %731 = vmatpush1.msra.mxu0 %v2097_v55  ;;  %822 = vmatprep.subr.mxu1 %v1919_v21  ;;  %v2460_v55 = vand.u32 4294901760, %v1741_v33  ;;  %v2465_v33 = vand.u32 4294901760, %v1803_v61  ;;  %v2470_v61 = vand.u32 4294901760, %v1849_v54  ;;  %v2488_v54 = vld [vmem:[#allocation35_spill] sm:$0xff] }
  0x8f   : > { %767 = vmatmul.mubr.f32.vlgmr.msra.gmra.mxu0 %v2052_v15  ;;  %882 = vmatprep.subr.mxu0 %v2454_v31  ;;  %v2462_v31 = vld [vmem:[#allocation33_spill] sm:$0xff] }
  0x90   : > { %824 = vmatpush1.msra.mxu1 %v2455_v38  ;;  %886 = vmatpush1.msra.mxu0 %v2456_v50 }
  0x91   : > { %826 = vmatprep.subr.mxu1 %v2457_v56  ;;  %890 = vmatprep.subr.mxu0 %v2458_v9 }
  0x92   : > { %828 = vmatpush1.msra.mxu1 %v2459_v1  ;;  %894 = vmatpush1.msra.mxu0 %v2460_v55  ;;  %v2467_v55 = vand.u32 4294901760, %v1815_v2  ;;  %v2471_v2 = vand.u32 4294901760, %v1863_v60  ;;  %v2490_v60 = vld [vmem:[#allocation27_spill] sm:$0xff] }
  0x93   : > { %830 = vmatprep.subr.mxu1 %v1966_v28  ;;  %898 = vmatprep.subr.mxu0 %v2461_v20 }
  0x94   : > { %832 = vmatpush1.msra.mxu1 %v2462_v31  ;;  %902 = vmatpush1.msra.mxu0 %v2463_v25 }
  0x95   : > { %834 = vmatprep.subr.mxu1 %v1999_v43  ;;  %906 = vmatprep.subr.mxu0 %v2464_v27 }
  0x96   : > { %836 = vmatpush1.msra.mxu1 %v2015_v32  ;;  %869 = vmatprep.mubr.f32.mxu1 %v2441_v39 }
  0x97   : > { %910 = vmatpush1.msra.mxu0 %v2465_v33  ;;  %873 = vmatmul.mubr.f32.vlgmr.msra.gmra.mxu1 %v2466_v37 }
  0x98   : > { %914 = vmatprep.subr.mxu0 %v2467_v55  ;;  %1048 = vmatprep.subr.mxu1 %v1686_v4  ;;  %v2472_v4 = vand.u32 4294901760, %v1875_v44  ;;  %v2486_v44 = vand.u32 4294901760, %v2057_v7 }
  0x99   : > { %918 = vmatpush1.msra.mxu0 %v2468_v42  ;;  %1050 = vmatpush1.msra.mxu1 %v1688_v5  ;;  %v2473_v5 = vand.u32 4294901760, %v1896_v59  ;;  %v2489_v59 = vand.u32 4294901760, %v2488_v54 }
  0x9a   : > { %922 = vmatprep.subr.mxu0 %v2469_v47  ;;  %1052 = vmatprep.subr.mxu1 %v1690_v6  ;;  %v2474_v6 = vand.u32 4294901760, %v1909_v8  ;;  %v2491_v8 = vand.u32 4294901760, %v2089_v57 }
  0x9b   : > { %926 = vmatpush1.msra.mxu0 %v2470_v61  ;;  %1054 = vmatpush1.msra.mxu1 %v1694_v11  ;;  %v2475_v11 = vand.u32 4294901760, %v1927_v51  ;;  %v2493_v51 = vld [vmem:[#allocation36_spill] sm:$0xff] }
  0x9c   : > { %930 = vmatprep.subr.mxu0 %v2471_v2  ;;  %1056 = vmatprep.subr.mxu1 %v1696_v12  ;;  %v2476_v12 = vand.u32 4294901760, %v1940_v0  ;;  %v2494_v0 = vand.u32 4294901760, %v2493_v51 }
  0x9d   : > { %934 = vmatpush1.msra.mxu0 %v2472_v4  ;;  %1058 = vmatpush1.msra.mxu1 %v1698_v13  ;;  %v2477_v13 = vand.u32 4294901760, %v1952_v62  ;;  %v2483_v62 = vand.u32 4294901760, %v2028_v63  ;;  %v2496_v63 = vld [vmem:[#allocation34_spill] sm:$0xff] }
  0x9e   : > { %938 = vmatprep.subr.mxu0 %v2473_v5  ;;  %1060 = vmatprep.subr.mxu1 %v1701_v17  ;;  %v2478_v17 = vand.u32 4294901760, %v1963_v29  ;;  %v2492_v29 = vld [vmem:[#allocation28_spill] sm:$0xff] }
  0x9f   : > { %942 = vmatpush1.msra.mxu0 %v2474_v6  ;;  %1062 = vmatpush1.msra.mxu1 %v1703_v18  ;;  %v2479_v18 = vand.u32 4294901760, %v1977_v3  ;;  %v2484_v3 = vand.u32 4294901760, %v2036_v23 }
  0xa0   : > { %946 = vmatprep.subr.mxu0 %v2475_v11  ;;  %1064 = vmatprep.subr.mxu1 %v1705_v19  ;;  %v2480_v19 = vand.u32 4294901760, %v1989_v52  ;;  %v2495_v52 = vld [vmem:[#allocation29_spill] sm:$0xff] }
  0xa1   : > { %950 = vmatpush1.msra.mxu0 %v2476_v12  ;;  %1066 = vmatpush1.msra.mxu1 %v1718_v24  ;;  %v2481_v24 = vand.u32 4294901760, %v2008_v10 }
  0xa2   : > { %954 = vmatprep.subr.mxu0 %v2477_v13  ;;  %1068 = vmatprep.subr.mxu1 %v1724_v26  ;;  %v2482_v26 = vand.u32 4294901760, %v2019_v16 }
  0xa3   : > { %958 = vmatpush1.msra.mxu0 %v2478_v17  ;;  %1070 = vmatpush1.msra.mxu1 %v2442_v53 }
  0xa4   : > { %962 = vmatprep.subr.mxu0 %v2479_v18  ;;  %1072 = vmatprep.subr.mxu1 %v2443_v22 }
  0xa5   : > { %966 = vmatpush1.msra.mxu0 %v2480_v19  ;;  %1074 = vmatpush1.msra.mxu1 %v2444_v58  ;;  %v1151_v58 = vld [vmem:[%s2335_s4] sm:$0x3] }
  0xa6   : > { %970 = vmatprep.subr.mxu0 %v2481_v24  ;;  %1076 = vmatprep.subr.mxu1 %v2445_v40 }
  0xa7   : > { %974 = vmatpush1.msra.mxu0 %v2482_v26  ;;  %1078 = vmatpush1.msra.mxu1 %v2446_v41 }
  0xa8   : > { %978 = vmatprep.subr.mxu0 %v2483_v62  ;;  %1080 = vmatprep.subr.mxu1 %v2447_v46 }
  0xa9   : > { %982 = vmatpush1.msra.mxu0 %v2484_v3  ;;  %1082 = vmatpush1.msra.mxu1 %v2448_v48 }
  0xaa   : > { %986 = vmatprep.subr.mxu0 %v2485_v14  ;;  %1084 = vmatprep.subr.mxu1 %v2449_v35 }
  0xab   : > { %990 = vmatpush1.msra.mxu0 %v2486_v44  ;;  %1086 = vmatpush1.msra.mxu1 %v2450_v30 }
  0xac   : > { %994 = vmatprep.subr.mxu0 %v2487_v45  ;;  %1088 = vmatprep.subr.mxu1 %v2451_v36 }
  0xad   : > { %998 = vmatpush1.msra.mxu0 %v2489_v59  ;;  %1090 = vmatpush1.msra.mxu1 %v2490_v60 }
  0xae   : > { %1002 = vmatprep.subr.mxu0 %v2491_v8  ;;  %1092 = vmatprep.subr.mxu1 %v2492_v29 }
  0xaf   : > { %1006 = vmatpush1.msra.mxu0 %v2494_v0  ;;  %1039 = vmatprep.mubr.f32.mxu0 %v2441_v39 }
  0xb0   : > { %1094 = vmatpush1.msra.mxu1 %v2495_v52  ;;  %1041 = vmatmul.mubr.f32.vlgmr.msra.gmra.mxu0 %v2496_v63 }
  0xb1   : > { %1096 = vmatprep.subr.mxu1 %v1919_v21  ;;  %1143 = vmatprep.mubr.f32.mxu1 %v2441_v39  ;;  %v286_v21 = vlaneseq }
  0xb2   : > { %1098 = vmatpush1.msra.mxu1 %v2455_v38 }
  0xb3   : > { %1100 = vmatprep.subr.mxu1 %v2457_v56  ;;  %v287_v10 = vshrl.u32 %v286_v21, 7 }
  0xb4   : > { %1102 = vmatpush1.msra.mxu1 %v2459_v1  ;;  %v252_v1 = vld [vmem:[%s251_s18] ss:$8 sm:$0x3] }
  0xb5   : > { %1104 = vmatprep.subr.mxu1 %v1966_v28  ;;  %v288_v16 = vsub.s32 0, %v287_v10  ;;  %v292_v28 = vsub.s32 1, %v287_v10 }
  0xb6   : > { %1106 = vmatpush1.msra.mxu1 %v2462_v31  ;;  %v1167_v31 = vand.u32 127, %v286_v21 }
  0xb7   : > { %1108 = vmatprep.subr.mxu1 %v1999_v43  ;;  %v289_v38 = vrot.slane %v252_v1, %v288_v16  ;;  %v293_v43 = vrot.slane %v252_v1, %v292_v28  ;;  %v1156_v30 = vrot.slane %v1151_v58, %v288_v16  ;;  %v1160_v33 = vrot.slane %v1151_v58, %v292_v28 }
  0xb8   : > { %1110 = vmatpush1.msra.mxu1 %v2015_v32  ;;  %vm1168_vm0 = vcmp.lt.s32.totalorder %v1167_v31, 18 }
  0xb9   : > { %1145 = vmatmul.mubr.f32.vlgmr.msra.gmra.mxu1 %v2496_v63 }
 0x12e   : > { %v399_v7 = vpop.f32.mrf.mxu0 }
 0x12f   : > { %v400_v32 = vadd.f32 %v399_v7, %v289_v38 }
 0x130   : > { %v401_v23 = vpop.f32.mrf.mxu0 }
 0x131   : > { %v402_v50 = vadd.f32 %v401_v23, %v293_v43 }
 0x135   : > { %v631_v49 = vpop.f32.mrf.mxu1 }
 0x136   : > { %v632_v9 = vadd.f32 %v631_v49, %v400_v32 }
 0x137   : > { %v633_v34 = vpop.f32.mrf.mxu1 }
 0x138   : > { %v634_v39 = vadd.f32 %v633_v34, %v402_v50 }
 0x14f   : > { %v768_v15 = vpop.f32.mrf.mxu0 }
 0x150   : > { %v769_v53 = vadd.f32 %v768_v15, %v632_v9 }
 0x151   : > { %v770_v56 = vpop.f32.mrf.mxu0 }
 0x152   : > { %v771_v40 = vadd.f32 %v770_v56, %v634_v39 }
 0x157   : > { %v874_v57 = vpop.f32.mrf.mxu1 }
 0x158   : > { %v875_v41 = vadd.f32 %v874_v57, %v769_v53 }
 0x159   : > { %v876_v22 = vpop.f32.mrf.mxu1 }
 0x15a   : > { %v877_v48 = vadd.f32 %v876_v22, %v771_v40 }
 0x170   : > { %v1042_v36 = vpop.f32.mrf.mxu0 }
 0x171   : > { %v1043_v35 = vadd.f32 %v1042_v36, %v875_v41 }
 0x172   : > { %v1044_v46 = vpop.f32.mrf.mxu0 }
 0x173   : > { %v1045_v25 = vadd.f32 %v1044_v46, %v877_v48 }
 0x179   : > { %v1146_v20 = vpop.f32.mrf.mxu1 }
 0x17a   : > { %v1147_v27 = vadd.f32 %v1146_v20, %v1043_v35 }
 0x17b   : > { %v1148_v37 = vpop.f32.mrf.mxu1 }
 0x17c   : > { %v1149_v55 = vadd.f32 %v1148_v37, %v1045_v25  ;;  %v1163_v42 = vadd.f32 %v1156_v30, %v1147_v27 }
 0x17e   : > { %v1164_v47 = vadd.f32 %v1160_v33, %v1149_v55  ;;  %1165 = vst [vmem:[#allocation10] sm:$0x1] %v1163_v42 }
 0x180   : > { %v1169_v61 = vsel %vm1168_vm0, %v1164_v47, -1e+30 }
 0x181   : > { %v1171_v2 = vsel %vm1170_vm1, %v1169_v61, -inf }
 0x182   : > { %1172 = vmax.xlane.f32.xlu0 %v1171_v2 }
 0x20b   : > { %v1173_v4 = vpop.xlane.xlu0 %1172 }
 0x20c   : > { %v1174_v5 = vsub.f32 %v1169_v61, %v1173_v4 }
 0x20e   : > { %v1175_v6 = vmul.f32 1.442695, %v1174_v5 }
 0x210   : > { %1374 = vpow2.f32 %v1175_v6 }
 0x21d   : > { %v1375_v11 = vpop.eup %1374 }
 0x21e   : > { %v1177_v12 = vsel %vm1170_vm1, %v1375_v11, 0.0 }
 0x21f   : > { %1178 = vadd.xlane.f32.xlu0 %v1177_v12 }
 0x220   : > { %1451 = shalt.err (!%p1448_p2)
}
 0x221   : > { %p2498_p4 = pmov %p2497_p13  ;;  %s1297_s13 = sshll.u32 %s1605_s0, 4 }
 0x222   : > { %s1197_s14 = sshll.u32 %s1679_s7, 4  ;;  %s1195_s17 = scalar_lea.hbm %s2336_s5, %s1297_s13  ;;  %s1198_s14 = int_to_ptr.vmem [resolvable:$true] %s1197_s14 }
 0x223   : > { %1313 = dma.vmem_to_hbm [thread:$0]  (%p2498_p4), %s1209_s22, 16, %s2337_s6, [#allocation11]  }
 0x224   : > { %s1185_s18 = scalar_lea.sflag [#allocation6], %s232_s30  ;;  %s1462_s19 = scalar_lea.vmem %s1198_s14, 16 }
 0x225   : > { %p1463_p9 = scmp.ne.s32.totalorder %s1198_s14, %s1462_s19  ;;  %s1545_s20 = smov [#allocation9]  }
 0x226   : > { %s1466_s21 = sshll.u32 %s1545_s20, 4  ;;  %s1467_s21 = int_to_ptr.vmem [resolvable:$false] %s1466_s21 }
 0x227   : > { %p1464_p0 = pnand %p1463_p9, %p1624_p5  ;;  %s1468_s22 = scalar_lea.vmem %s1467_s21, 32 }
 0x228   : > { %p1469_p10 = scmp.lt.s32.totalorder %s1198_s14, %s1467_s21  ;;  %p1470_p11 = scmp.lt.s32.totalorder %s1468_s22, %s1462_s19 }
 0x229   : > { %p1465_p6 = pneg %p1464_p0 }
 0x22a   : > { %p1471_p13 = por %p1470_p11, %p1469_p10 }
 0x22c   : > { %p1472_p8 = pnand %p1471_p13, %p1465_p6 }
 0x2a8   : > { %v1179_v13 = vpop.xlane.xlu0 %1178 }
 0x2a9   : > { %1376 = vlog2.f32 %v1179_v13 }
 0x2b6   : > { %v1377_v17 = vpop.eup %1376 }
 0x2b7   : > { %v1181_v18 = vmul.f32 0.6931472, %v1377_v17 }
 0x2b9   : > { %v1182_v19 = vsub.f32 %v1174_v5, %v1181_v18 }
 0x2bb   : > { %1183 = vst [vmem:[%s1679_s7] sm:$0x1] %v1182_v19 }
 0x2bc   : > { %1475 = shalt.err (!%p1472_p8)
}
 0x2bd   : > { %s1476_s23 = scalar_lea.hbm %s1195_s17, 16  ;;  %s1480_s28 = scalar_lea.hbm %s2336_s5, 96 }
 0x2be   : > { %p1477_p12 = scmp.ne.s32.totalorder %s1195_s17, %s1476_s23  ;;  %p1481_p7 = scmp.lt.s32.totalorder %s1195_s17, %s2336_s5 }
 0x2bf   : > { %p1482_p2 = scmp.lt.s32.totalorder %s1480_s28, %s1476_s23 }
 0x2c0   : > { %p1478_p1 = pnand %p1477_p12, %p1624_p5 }
 0x2c1   : > { %p1483_p4 = por %p1482_p2, %p1481_p7 }
 0x2c2   : > { %p1479_p3 = pneg %p1478_p1 }
 0x2c4   : > { %p1484_p9 = pnand %p1483_p4, %p1479_p3 }
 0x2c6   : > { %1487 = shalt.err (!%p1484_p9)
}
 0x2c7   : > { %1311 = dma.vmem_to_hbm [thread:$0]  (%p1624_p5), %s1198_s14, 16, %s1195_s17, %s1185_s18  }
 0x2c8   : > { %p2499_p0 = scmp.eq.s32.totalorder %s1605_s0, 5 }
 0x2ca   : > { %1515 = dma.done.wait (%p2499_p0), [#allocation11], 16   ;;  %p2500_p6 = pmov %p2499_p0 }
 0x2cc   : > { %1517 = vsyncadd (%p2500_p6), [#allocation11], 4294967280 }
 0x2cd PF: > { %p1334_p10 = scmp.ge.s32.totalorder %s1536_s27, 2  ;;  %s1224_s13 = sand.u32 1, %s1524_s24  }
 0x2ce   : > { %p2501_p11 = scmp.ne.s32.totalorder %s2406_s10, 0  ;;  %s1225_s15 = scalar_lea.sflag [#allocation6], %s1224_s13 }
 0x2d0   : > { %p1325_p13 = pnand %p1334_p10, %p2501_p11 }
 0x2d2   : > { %p1326_p8 = pneg %p1325_p13 }
 0x2d4   : > { %1519 = dma.done.wait (%p1326_p8), %s1225_s15, 16  }
 0x2d5   : > { %1521 = vsyncadd (%p1326_p8), %s1225_s15, 4294967280  ;;  %p24_p5 = scmp.ge.s32.totalorder %s1609_s29, 8   ;;  %s2502_s24 = smov %s1528_s25 }
 0x2d6   : > { %s2503_s25 = smov %s1532_s26  ;;  %s2504_s26 = smov %s1620_s8 }
 0x2d7   : > { %s2505_s27 = smov %s1609_s29  ;;  %26 = sbr.rel (!%p24_p5) target bundleno = 11 (0xb), region = 90 }
 0x2dc   :  { %1229 = vsyncpa [#allocation5], 1 }
 0x2dd   :  { %1231 = vsyncpa [#allocation5 + $0x1], 1 }
 0x2de   :  { %1232 = vsyncpa [#allocation8], 1 }
 0x2df   :  { %1233 = vsyncpa [#allocation6], 1 }
 0x2e0   :  { %1235 = vsyncpa [#allocation6 + $0x1], 1 }
 0x2e1   :  { %1236 = vsyncpa [#allocation11], 1 }

</bundles_post_ra>
